<compile_context>
chip_gen: v6e
topology: v6e:2x2x1
jax: 0.10.0
libtpu: 0.0.40
codegen_flags: <defaults>
</compile_context>

<pallas_src>
import functools

import jax
import jax.numpy as jnp
from jax import lax
from jax.experimental import pallas as pl
from jax.experimental.pallas import tpu as pltpu

F_IN, H1, H2, F_OUT = 2, 30, 20, 1

# Packed-parameter layout (single (64, 128) f32 block, one resident DMA):
#   rows  0..29 , cols 0..1  : w1  (30, 2)     rows  0..29 , col 32 : b1
#   rows 32..51 , cols 0..29 : w2  (20, 30)    rows 32..51 , col 32 : b2
#   row  56     , cols 0..19 : w3  (1, 20)     row  56     , col 32 : b3
_W2_ROW, _W3_ROW = 32, 56
_BCOL = 32
_P_ROWS, _P_COLS = 64, 128

_CHUNK = 512  # lane-chunk inside the kernel: keeps h1/h2 in vregs per chunk


def _round_up(x, m):
    return (x + m - 1) // m * m


def _choose_tiles(b, max_tb):
    """Pick (batch_tile, lane_chunk), both multiples of 128, chunk | tile."""
    b128 = _round_up(max(b, 1), 128)
    if b128 <= _CHUNK:
        return b128, b128                      # single small tile; chunk == tile
    # >= 2 grid steps for big batches (v7x megacore), tile a multiple of _CHUNK.
    half = _round_up((b128 + 1) // 2, _CHUNK)
    tb = min(_round_up(max(max_tb, _CHUNK), _CHUNK), half)
    return tb, _CHUNK


def _actor_kernel(p_ref, x_ref, out_ref, *, chunk, num_chunks):
    # Parameters: loaded once per grid step from the single resident block.
    w1 = p_ref[0:H1, 0:F_IN]                          # (30, 2)
    b1 = p_ref[0:H1, _BCOL:_BCOL + 1]                 # (30, 1)
    w2 = p_ref[_W2_ROW:_W2_ROW + H2, 0:H1]            # (20, 30)
    b2 = p_ref[_W2_ROW:_W2_ROW + H2, _BCOL:_BCOL + 1]  # (20, 1)
    w3 = p_ref[_W3_ROW:_W3_ROW + F_OUT, 0:H2]         # (1, 20)
    b3 = p_ref[_W3_ROW:_W3_ROW + F_OUT, _BCOL:_BCOL + 1]  # (1, 1)

    def body(c, carry):
        j = pl.multiple_of(c * chunk, chunk)
        x = x_ref[:, pl.ds(j, chunk)]                              # (2, C)
        # Layer 1: Linear(2 -> 30) + ReLU  (MXU, f32 accumulation)
        h1 = jnp.dot(w1, x, preferred_element_type=jnp.float32) + b1
        h1 = jnp.maximum(h1, 0.0)                                  # (30, C)
        # Layer 2: Linear(30 -> 20) + ReLU (MXU)
        h2 = jnp.dot(w2, h1, preferred_element_type=jnp.float32) + b2
        h2 = jnp.maximum(h2, 0.0)                                  # (20, C)
        # Layer 3: Linear(20 -> 1) + Tanh  (MXU)
        h3 = jnp.dot(w3, h2, preferred_element_type=jnp.float32) + b3
        out_ref[:, pl.ds(j, chunk)] = jnp.tanh(h3)                 # (1, C)
        return carry

    unroll = True if num_chunks <= 8 else 8
    lax.fori_loop(0, num_chunks, body, 0, unroll=unroll)


def pack_params(params):
    """Pack (w1,b1,w2,b2,w3,b3) into one (64,128) f32 block.

    Call once per parameter update, NOT per forward pass.
    """
    w1, b1, w2, b2, w3, b3 = params
    p = jnp.zeros((_P_ROWS, _P_COLS), jnp.float32)
    p = p.at[0:H1, 0:F_IN].set(w1.astype(jnp.float32))
    p = p.at[_W2_ROW:_W2_ROW + H2, 0:H1].set(w2.astype(jnp.float32))
    p = p.at[_W3_ROW:_W3_ROW + F_OUT, 0:H2].set(w3.astype(jnp.float32))
    p = p.at[0:H1, _BCOL].set(b1.astype(jnp.float32))
    p = p.at[_W2_ROW:_W2_ROW + H2, _BCOL].set(b2.astype(jnp.float32))
    p = p.at[_W3_ROW:_W3_ROW + F_OUT, _BCOL].set(b3.astype(jnp.float32))
    return p


@functools.partial(jax.jit, static_argnames=("max_tb",))
def actor_forward(state, packed_params, *, max_tb=16384):
    """state: (B, ...) flattened to (B, 2).  Returns (B, 1) float32."""
    b = state.shape[0]
    x = state.reshape(b, -1).astype(jnp.float32)       # nn.Flatten()
    assert x.shape[1] == F_IN, "ActorNetwork expects 2 input features"

    tb, chunk = _choose_tiles(b, max_tb)
    b_pad = _round_up(b, tb)

    # Feature-major: batch on the lane axis (lane-dense I/O).  Transpose + pad
    # fuse into a single XLA op under jit; padded lanes are discarded below.
    xt = x.T                                            # (2, B)
    if b_pad != b:
        xt = jnp.pad(xt, ((0, 0), (0, b_pad - b)))

    kernel = functools.partial(_actor_kernel, chunk=chunk, num_chunks=tb // chunk)
    out = pl.pallas_call(
        kernel,
        out_shape=jax.ShapeDtypeStruct((F_OUT, b_pad), jnp.float32),
        grid=(b_pad // tb,),
        in_specs=[
            pl.BlockSpec((_P_ROWS, _P_COLS), lambda i: (0, 0)),  # packed params
            pl.BlockSpec((F_IN, tb), lambda i: (0, i)),          # x tile (2, TB)
        ],
        out_specs=pl.BlockSpec((F_OUT, tb), lambda i: (0, i)),   # (1, TB)
        compiler_params=pltpu.CompilerParams(
            dimension_semantics=("parallel",),        # v7x: shard across 2 TCs
            vmem_limit_bytes=32 * 1024 * 1024,        # ample headroom everywhere
        ),
    )(packed_params, xt)

    # (1, b_pad) -> drop padding -> (B, 1) via layout-free reshape (no transpose).
    return out[:, :b].reshape(b, F_OUT)


def init_params(key):
    """Deterministic init mimicking PyTorch Linear default U(-1/sqrt(fan_in), +).

    Weights are stored in PyTorch's native (out, in) layout.
    """
    def linear(key, fan_in, fan_out):
        kw, kb = jax.random.split(key)
        bound = 1.0 / float(fan_in) ** 0.5
        w = jax.random.uniform(kw, (fan_out, fan_in), jnp.float32, -bound, bound)
        b = jax.random.uniform(kb, (fan_out,), jnp.float32, -bound, bound)
        return w, b

    k1, k2, k3 = jax.random.split(key, 3)
    w1, b1 = linear(k1, F_IN, H1)
    w2, b2 = linear(k2, H1, H2)
    w3, b3 = linear(k3, H2, F_OUT)
    return (w1, b1, w2, b2, w3, b3)


def _reference(state, params):
    """Pure-JAX reference (PyTorch forward semantics)."""
    w1, b1, w2, b2, w3, b3 = params
    x = state.reshape(state.shape[0], -1)
    h = jnp.maximum(x @ w1.T + b1, 0.0)
    h = jnp.maximum(h @ w2.T + b2, 0.0)
    return jnp.tanh(h @ w3.T + b3)


if __name__ == "__main__":
    key = jax.random.PRNGKey(0)
    k_state, k_params = jax.random.split(key)

    params = init_params(k_params)
    packed = pack_params(params)      # once per parameter update, not per call

    # Small primary check (single grid step, single lane chunk).
    B = 8
    state = jax.random.normal(k_state, (B, F_IN), jnp.float32)
    out = actor_forward(state, packed)
    jax.block_until_ready(out)
    ref = _reference(state, params)
    assert out.shape == (B, 1)
    assert jnp.allclose(out, ref, atol=1e-5, rtol=1e-5)

    # Exercise the multi-grid-step, multi-chunk and lane-padding paths.
    B2 = 3000
    state2 = jax.random.normal(jax.random.PRNGKey(1), (B2, F_IN), jnp.float32)
    out2 = actor_forward(state2, packed)
    jax.block_until_ready(out2)
    ref2 = _reference(state2, params)
    assert out2.shape == (B2, 1)
    assert jnp.allclose(out2, ref2, atol=1e-5, rtol=1e-5)

    print("KERNEL_OK")
</pallas_src>

<mosaic_0001>
module attributes {stable_mosaic.version = 11 : i64} {
  func.func @_actor_kernel(%arg0: i32, %arg1: memref<64x128xf32, #tpu.memory_space<vmem>>, %arg2: memref<2x128xf32, #tpu.memory_space<vmem>>, %arg3: memref<1x128xf32, #tpu.memory_space<vmem>>) attributes {dimension_semantics = [#tpu.dimension_semantics<parallel>], iteration_bounds = array<i64: 1>, scalar_prefetch = 0 : i64, scratch_operands = 0 : i64, tpu.core_type = #tpu.core_type<tc>, window_params = [{pipeline_mode = #tpu.pipeline_mode<synchronous>, transform_indices = @transform_0, window_bounds = array<i64: 64, 128>}, {transform_indices = @transform_1, window_bounds = array<i64: 2, 128>}, {transform_indices = @transform_2, window_bounds = array<i64: 1, 128>}]} {
    %c0 = arith.constant 0 : index
    %c0_0 = arith.constant 0 : index
    %0 = vector.load %arg1[%c0, %c0_0] : memref<64x128xf32, #tpu.memory_space<vmem>>, vector<30x2xf32>
    %c0_1 = arith.constant 0 : index
    %c32 = arith.constant 32 : index
    %1 = vector.load %arg1[%c0_1, %c32] : memref<64x128xf32, #tpu.memory_space<vmem>>, vector<30x1xf32>
    %c32_2 = arith.constant 32 : index
    %c0_3 = arith.constant 0 : index
    %2 = vector.load %arg1[%c32_2, %c0_3] : memref<64x128xf32, #tpu.memory_space<vmem>>, vector<20x30xf32>
    %c32_4 = arith.constant 32 : index
    %c32_5 = arith.constant 32 : index
    %3 = vector.load %arg1[%c32_4, %c32_5] : memref<64x128xf32, #tpu.memory_space<vmem>>, vector<20x1xf32>
    %c56 = arith.constant 56 : index
    %c0_6 = arith.constant 0 : index
    %4 = vector.load %arg1[%c56, %c0_6] : memref<64x128xf32, #tpu.memory_space<vmem>>, vector<1x20xf32>
    %c56_7 = arith.constant 56 : index
    %c32_8 = arith.constant 32 : index
    %5 = vector.load %arg1[%c56_7, %c32_8] : memref<64x128xf32, #tpu.memory_space<vmem>>, vector<1x1xf32>
    %c0_i32 = arith.constant 0 : i32
    %c128_i32 = arith.constant 128 : i32
    %6 = arith.muli %c0_i32, %c128_i32 : i32
    %7 = tpu.assume_multiple %6, 128 : i32
    %c0_9 = arith.constant 0 : index
    %8 = arith.index_cast %7 : i32 to index
    %9 = vector.load %arg2[%c0_9, %8] : memref<2x128xf32, #tpu.memory_space<vmem>>, vector<2x128xf32>
    %cst = arith.constant dense<0.000000e+00> : vector<30x128xf32>
    %10 = tpu.matmul %0, %9, %cst {dimension_numbers = #tpu.dot_dimension_numbers<[1], [0], [0], [1], [0, 0, 1, 1], [], []>} : vector<30x2xf32>, vector<2x128xf32>, vector<30x128xf32> -> vector<30x128xf32>
    %11 = vector.broadcast %1 : vector<30x1xf32> to vector<30x128xf32>
    %12 = arith.addf %10, %11 : vector<30x128xf32>
    %cst_10 = arith.constant 0.000000e+00 : f32
    %13 = vector.broadcast %cst_10 : f32 to vector<30x128xf32>
    %14 = arith.maximumf %12, %13 : vector<30x128xf32>
    %cst_11 = arith.constant dense<0.000000e+00> : vector<20x128xf32>
    %15 = tpu.matmul %2, %14, %cst_11 {dimension_numbers = #tpu.dot_dimension_numbers<[1], [0], [0], [1], [0, 0, 1, 1], [], []>} : vector<20x30xf32>, vector<30x128xf32>, vector<20x128xf32> -> vector<20x128xf32>
    %16 = vector.broadcast %3 : vector<20x1xf32> to vector<20x128xf32>
    %17 = arith.addf %15, %16 : vector<20x128xf32>
    %cst_12 = arith.constant 0.000000e+00 : f32
    %18 = vector.broadcast %cst_12 : f32 to vector<20x128xf32>
    %19 = arith.maximumf %17, %18 : vector<20x128xf32>
    %cst_13 = arith.constant dense<0.000000e+00> : vector<1x128xf32>
    %20 = tpu.matmul %4, %19, %cst_13 {dimension_numbers = #tpu.dot_dimension_numbers<[1], [0], [0], [1], [0, 0, 1, 1], [], []>} : vector<1x20xf32>, vector<20x128xf32>, vector<1x128xf32> -> vector<1x128xf32>
    %21 = vector.broadcast %5 : vector<1x1xf32> to vector<1x128xf32>
    %22 = arith.addf %20, %21 : vector<1x128xf32>
    %23 = math.tanh %22 : vector<1x128xf32>
    %c0_14 = arith.constant 0 : index
    %24 = arith.index_cast %7 : i32 to index
    %25 = vector.load %arg3[%c0_14, %24] : memref<1x128xf32, #tpu.memory_space<vmem>>, vector<1x128xf32>
    tpu.vector_store %arg3[%c0_14, %24], %23 {strides = array<i32>} : memref<1x128xf32, #tpu.memory_space<vmem>>, vector<1x128xf32>,
    %c1_i32 = arith.constant 1 : i32
    return
  }
  func.func @transform_0(%arg0: i32) -> (i32, i32) {
    %c0_i32 = arith.constant 0 : i32
    %c0_i32_0 = arith.constant 0 : i32
    %c0_i32_1 = arith.constant 0 : i32
    return %c0_i32, %c0_i32_0 : i32, i32
  }
  func.func @transform_1(%arg0: i32) -> (i32, i32) {
    %c0_i32 = arith.constant 0 : i32
    %c0_i32_0 = arith.constant 0 : i32
    return %c0_i32, %arg0 : i32, i32
  }
  func.func @transform_2(%arg0: i32) -> (i32, i32) {
    %c0_i32 = arith.constant 0 : i32
    %c0_i32_0 = arith.constant 0 : i32
    return %c0_i32, %arg0 : i32, i32
  }
}

</mosaic_0001>

<bundles_post_ra>
// kernel: actor_forward.1
= control target key start
LH: loop header
LB: loop body
LE: loop exit
PB: predicated region body
PF: predicated region fallthrough
CT: control target
= control target key end

     0   :  { %7 = vsyncpa [#allocation3], 0  ;;  %s447_s9 = smov [#allocation2]   ;;  %s481_s0 = inlined_call_operand.hbm [shape: f32[64,128], index: 0, kind: input, shape index: {}]   ;;  %s482_s1 = inlined_call_operand.vmem [shape: f32[2,128], index: 1, kind: input, shape index: {}]   ;;  %s483_s2 = inlined_call_operand.vmem [shape: f32[1,128], index: 2, kind: output, shape index: {}]  }
   0x1   :  { %s13_s10 = sshll.u32 %s447_s9, 4  ;;  %s14_s10 = int_to_ptr.vmem [resolvable:$true] %s13_s10 }
   0x2   :  { %s433_s11 = scalar_lea.vmem %s14_s10, 1024  ;;  %p438_p1 = scmp.lt.s32.totalorder %s14_s10, %s14_s10 }
   0x3   :  { %p434_p0 = scmp.ne.s32.totalorder %s14_s10, %s433_s11  ;;  %p439_p2 = scmp.lt.s32.totalorder %s433_s11, %s433_s11 }
   0x5   :  { %p440_p3 = por %p439_p2, %p438_p1 }
   0x7   :  { %p441_p4 = pnand %p440_p3, %p434_p0 }
   0x9   :  { %444 = shalt.err (!%p441_p4)
}
   0xa   :  { %s448_s12 = smov 128   ;;  %s449_s13 = smov 8  }
   0xb   :  { %19 = dma.hbm_to_vmem [thread:$0]  %s481_s0, 1024, %s14_s10, [#allocation3], %s448_s12, %s448_s12, %s449_s13  }
   0xc   :  { %445 = dma.done.wait [#allocation3], 1024  }
   0xd   :  { %446 = vsyncadd [#allocation3], 4294966272  ;;  %v450_v0 = vmov 32   ;;  %vm63_vm0 = vcmask 1041408   ;;  %vm54_vm1 = vcmask 15360   ;;  %v25_v2 = vld [vmem:[#allocation2] sm:$0xff] }
   0xe   :  { %421 = vset.pattern.permute.xlu0 %v450_v0  ;;  %422 = vset.pattern.permute.xlu1 %v450_v0  ;;  %v33_v1 = vld [vmem:[%s482_s1] sm:$0x3]  ;;  %v26_v3 = vld [vmem:[#allocation2 + $0x8] sm:$0xff]  ;;  %v27_v4 = vld [vmem:[#allocation2 + $0x10] sm:$0xff]  ;;  %v451_v10 = vmov 0.0   ;;  %vm452_vm2 = vmmov 0  }
   0xf   :  { %381 = vmatprep.subr.msk.mxu0 %vm63_vm0, %v33_v1  ;;  %383 = vmatprep.mubr.msk.f32.mxu0 %vm54_vm1, %v25_v2  ;;  %v28_v5 = vld [vmem:[#allocation2 + $0x18] sm:$0x3f]  ;;  %v31_v6 = vld [vmem:[#allocation2 + $0x30] sm:$0xf]  ;;  %v30_v7 = vld [vmem:[#allocation2 + $0x28] sm:$0xff]  ;;  %vm178_vm3 = vcmask 1045504  }
  0x10   :  { %382 = vmatpush3.msk.msra.mxu0 %vm63_vm0, %v33_v1  ;;  %51 = vperm.xlu0 %421, %v28_v5   ;;  %v29_v8 = vld [vmem:[#allocation2 + $0x20] sm:$0xff]  ;;  %v32_v9 = vld [vmem:[#allocation2 + $0x38] sm:$0x1]  ;;  %vm171_vm4 = vcmask 244736   ;;  %vm273_vm5 = vcmask 1043456   ;;  %vm270_vm6 = vcmask 162816  }
  0x11   :  { %384 = vmatmul.mubr.msk.f32.vlgmr.msra.gmra.mxu0 %vm54_vm1, %v26_v3  ;;  %41 = vperm.xlu1 %422, %v26_v3  }
  0x12   :  { %386 = vmatprep.mubr.msk.f32.mxu0 %vm54_vm1, %v27_v4  ;;  %389 = vmatprep.subr.mxu1 %v451_v10 }
  0x13   :  { %406 = vmatprep.subr.mxu0 %v451_v10  ;;  %397 = vmatprep.mubr.msk.f32.mxu1 %vm452_vm2, %v451_v10 }
  0x14   :  { %46 = vperm.xlu0 %421, %v27_v4  }
  0x15   :  { %387 = vmatmul.mubr.msk.f32.gmra.mxu0 %vm54_vm1, %v28_v5  ;;  %36 = vperm.xlu1 %422, %v25_v2  }
  0x16   :  { %412 = vmatprep.mubr.msk.f32.mxu0 %vm452_vm2, %v451_v10 }
  0x18   :  { %168 = vperm.xlu0 %421, %v31_v6  }
  0x19   :  { %163 = vperm.xlu1 %422, %v30_v7  }
  0x1c   :  { %158 = vperm.xlu0 %421, %v29_v8  }
  0x1d   :  { %267 = vperm.xlu1 %422, %v32_v9  }
  0x8b   :  { %v52_v11 = vpop.permute.xlu0 %51 }
  0x8c   :  { %v42_v13 = vpop.permute.xlu1 %41 }
  0x8f   :  { %v47_v17 = vpop.permute.xlu0 %46 }
  0x90   :  { %v37_v22 = vpop.permute.xlu1 %36 }
  0x93   :  { %v169_v29 = vpop.permute.xlu0 %168 }
  0x94   :  { %v164_v32 = vpop.permute.xlu1 %163 }
  0x97   :  { %v159_v36 = vpop.permute.xlu0 %158 }
  0x98   :  { %v268_v42 = vpop.permute.xlu1 %267 }
  0xd1   :  { %v385_v12 = vpop.f32.mrf.mxu0 }
  0xd2   :  { %v139_v19 = vadd.f32 %v385_v12, %v42_v13 }
  0xd3   :  { %v133_v14 = vpop.f32.mrf.mxu0 }
  0xd4   :  { %v134_v23 = vadd.f32 %v133_v14, %v37_v22  ;;  %v153_v25 = vmax.f32 %v139_v19, 0.0 }
  0xd5   :  { %v388_v15 = vpop.f32.mrf.mxu0 }
  0xd6   :  { %v149_v16 = vadd.f32 %v388_v15, %v52_v11  ;;  %v152_v26 = vmax.f32 %v134_v23, 0.0 }
  0xd7   :  { %v143_v18 = vpop.f32.mrf.mxu0 }
  0xd8   :  { %v155_v20 = vmax.f32 %v149_v16, 0.0  ;;  %v144_v21 = vadd.f32 %v143_v18, %v47_v17 }
  0xda   :  { %v154_v24 = vmax.f32 %v144_v21, 0.0  ;;  %390 = vmatpush3.msk.msra.mxu1 %vm178_vm3, %v155_v20 }
  0xdb   :  { %391 = vmatprep.subr.mxu1 %v451_v10 }
  0xdc   :  { %392 = vmatpush3.msra.mxu1 %v154_v24 }
  0xdd   :  { %393 = vmatprep.subr.mxu1 %v451_v10 }
  0xde   :  { %394 = vmatpush3.msra.mxu1 %v153_v25 }
  0xdf   :  { %395 = vmatprep.subr.mxu1 %v451_v10 }
  0xe0   :  { %396 = vmatpush3.msra.mxu1 %v152_v26 }
  0xe1   :  { %398 = vmatmul.mubr.msk.f32.vlgmr.msra.gmra.mxu1 %vm171_vm4, %v29_v8 }
  0xe2   :  { %400 = vmatprep.mubr.msk.f32.mxu1 %vm452_vm2, %v451_v10 }
  0xe5   :  { %401 = vmatmul.mubr.msk.f32.gmra.mxu1 %vm171_vm4, %v30_v7 }
  0xe6   :  { %403 = vmatprep.mubr.msk.f32.mxu1 %vm452_vm2, %v451_v10 }
  0xe9   :  { %404 = vmatmul.mubr.msk.f32.gmra.mxu1 %vm171_vm4, %v31_v6 }
 0x1a1   :  { %v248_v27 = vpop.f32.mrf.mxu1 }
 0x1a2   :  { %v249_v38 = vadd.f32 %v248_v27, %v159_v36 }
 0x1a3   :  { %v399_v28 = vpop.f32.mrf.mxu1 }
 0x1a4   :  { %v262_v41 = vmax.f32 %v249_v38, 0.0 }
 0x1a5   :  { %v253_v30 = vpop.f32.mrf.mxu1 }
 0x1a6   :  { %v254_v34 = vadd.f32 %v253_v30, %v164_v32 }
 0x1a7   :  { %v402_v31 = vpop.f32.mrf.mxu1 }
 0x1a8   :  { %v263_v40 = vmax.f32 %v254_v34, 0.0 }
 0x1a9   :  { %v258_v33 = vpop.f32.mrf.mxu1 }
 0x1aa   :  { %v259_v35 = vadd.f32 %v258_v33, %v169_v29 }
 0x1ab   :  { %v405_v37 = vpop.f32.mrf.mxu1 }
 0x1ac   :  { %v264_v39 = vmax.f32 %v259_v35, 0.0 }
 0x1ae   :  { %407 = vmatpush3.msk.msra.mxu0 %vm273_vm5, %v264_v39 }
 0x1af   :  { %408 = vmatprep.subr.mxu0 %v451_v10 }
 0x1b0   :  { %409 = vmatpush3.msra.mxu0 %v263_v40 }
 0x1b1   :  { %410 = vmatprep.subr.mxu0 %v451_v10 }
 0x1b2   :  { %411 = vmatpush3.msra.mxu0 %v262_v41 }
 0x1b3   :  { %413 = vmatmul.mubr.msk.f32.vlgmr.msra.gmra.mxu0 %vm270_vm6, %v32_v9 }
 0x273   :  { %v343_v43 = vpop.f32.mrf.mxu0 }
 0x274   :  { %v344_v44 = vadd.f32 %v343_v43, %v268_v42 }
 0x275   :  { %v414_v45 = vpop.f32.mrf.mxu0 }
 0x276   :  { %423 = vtanh.f32 %v344_v44 }
 0x283   :  { %v424_v46 = vpop.eup %423 }
 0x284   :  { %348 = vst [vmem:[%s483_s2] sm:$0x1] %v424_v46 }
 0x285   :  { %353 = vsyncpa [#allocation3], 1 }

</bundles_post_ra>
